<compile_context>
chip_gen: v7x
topology: tpu7x:2x2x1
jax: 0.10.0
libtpu: 0.0.40
codegen_flags: <defaults>
</compile_context>

<pallas_src>
import functools

import jax
import jax.numpy as jnp
from jax import lax
from jax.experimental import pallas as pl
from jax.experimental.pallas import tpu as pltpu


def _ds2_down_kernel(xs_ref, w1_ref, b1_ref, w2_ref, o_ref, ypad_ref, *,
                     negval, n_img, OH, OW):
    """One grid step processes `n_img` images.

    xs_ref:   (n_img*OH*OW, Kc1)  conv1 stride-2 im2col (taps pre-fused in wrapper)
    w1_ref:   (Kc1, C)            conv1 weights in fused-tap layout
    b1_ref:   (1, C)              conv1 bias (f32)
    w2_ref:   (9*C, C2)           conv2 weights stacked per (kh, kw) tap
    o_ref:    (n_img*OH*OW, C2)   UNPADDED output block (C2 == full array dim)
    ypad_ref: (OH+2, OW+2, C)     per-image pad=1 halo scratch (VMEM)
    """
    OHOW = OH * OW
    C = w1_ref.shape[1]
    C2 = o_ref.shape[1]

    # Loop-invariant weight loads, hoisted out of the per-image loop.
    w1v = w1_ref[...]
    b1v = b1_ref[...].astype(jnp.float32)
    w2_taps = [w2_ref[t * C:(t + 1) * C, :] for t in range(9)]   # 9 x (C, C2)

    def process_image(r0):
        # ---- conv1 (stride 2, bias) as ONE fused-tap MXU matmul, f32 acc ----
        x_img = xs_ref[pl.ds(r0, OHOW), :]
        y1 = jnp.dot(x_img, w1v, preferred_element_type=jnp.float32)
        y1 = y1 + b1v
        y1 = jnp.where(y1 >= 0, y1, negval * y1)          # LeakyReLU(negval)

        # ---- pad=1 halo: one wide zero of the tiny scratch + interior store.
        # Not hoisted behind program_id==0: unsafe under "parallel"/megacore.
        ypad_ref[...] = jnp.zeros(ypad_ref.shape, ypad_ref.dtype)
        ypad_ref[1:OH + 1, 1:OW + 1, :] = (
            y1.astype(ypad_ref.dtype).reshape(OH, OW, C))

        # ---- conv2 (3x3 / stride 1 / no bias): 9 accumulating MXU matmuls on
        # shifted halo windows -- no 9-way concat, no (M, 9C) p2 operand.
        acc = jnp.zeros((OHOW, C2), jnp.float32)
        for t in range(9):
            kh, kw = divmod(t, 3)
            win = ypad_ref[kh:kh + OH, kw:kw + OW, :].reshape(OHOW, C)
            acc = acc + jnp.dot(win, w2_taps[t],
                                preferred_element_type=jnp.float32)

        # Unpadded store: masked-store cost sits on compute slack, HBM bytes 1x.
        o_ref[pl.ds(r0, OHOW), :] = acc.astype(o_ref.dtype)

    if n_img == 1:
        process_image(0)                      # fully static indexing
    else:
        # fori_loop (not a Python for) bounds per-image live ranges so large
        # batch blocks never spill y1/acc to VMEM.
        def body(b, carry):
            r0 = b * OHOW
            if OHOW % 8 == 0:
                r0 = pl.multiple_of(r0, 8)    # sublane-aligned dynamic slices
            process_image(r0)
            return carry
        lax.fori_loop(0, n_img, body, 0)


def _vmem_block_estimate(n_img, OH, OW, Kc1, C, C2, op_bytes, out_bytes):
    """Rough per-step VMEM use: double-buffered in/out/weights + halo scratch."""
    rows = n_img * OH * OW
    w_bytes = (Kc1 * C + 9 * C * C2) * op_bytes + C * 4
    scratch = (OH + 2) * (OW + 2) * C * op_bytes
    return 2 * (rows * Kc1 * op_bytes + rows * C2 * out_bytes + w_bytes) + scratch


def _pick_batch_block(B, OH, OW, Kc1, C, C2, op_bytes, out_bytes, *,
                      target_rows=8192, vmem_budget=24 * 1024 * 1024,
                      min_grid=2):
    """Largest divisor of B whose per-step block fits a v7x-safe VMEM budget,
    preferring a grid of >= `min_grid` steps (pipelining / megacore) when B
    allows it. Falls back to 1 (always legal). Non-divisible remainders are not
    tiled.  # TODO(synk): add a tail block for prime/awkward batch sizes."""
    ohow = OH * OW
    ok = [d for d in range(1, B + 1)
          if B % d == 0 and d * ohow <= target_rows
          and _vmem_block_estimate(d, OH, OW, Kc1, C, C2, op_bytes,
                                   out_bytes) <= vmem_budget]
    if not ok:
        return 1
    pref = [d for d in ok if B // d >= min_grid]
    return max(pref) if pref else max(ok)


@functools.partial(jax.jit, static_argnames=("negval", "operand_dtype"))
def ds2_down(x_nchw, w1, b1, w2, *, negval, operand_dtype=jnp.bfloat16):
    """x_nchw: (B, C, H, W); w1: (K,K,C,C) HWIO; b1: (C,); w2: (3,3,C,2C) HWIO.
    Returns (B, 2C, H//2, W//2) NCHW, matching the PyTorch module.
    operand_dtype: MXU operand dtype (bf16 default; accumulation stays f32)."""
    B, C, H, W = x_nchw.shape
    K = w1.shape[0]
    if K % 2 != 1:
        raise ValueError("conv1 kernel_size must be odd")
    if H % 2 or W % 2:
        raise ValueError("DS2_DOWN Pallas kernel requires even H and W")
    pad = K // 2
    OH, OW = H // 2, W // 2
    OHOW = OH * OW
    C2 = w2.shape[-1]
    Kb = K // 2 + 1                      # conv1 window size on the s2d grid
    Kc1 = Kb * Kb * 4 * C                # conv1 fused contraction depth (64)
    op_dtype = operand_dtype
    op_bytes = jnp.dtype(op_dtype).itemsize
    out_bytes = jnp.dtype(x_nchw.dtype).itemsize

    # ---- wrapper layout plumbing (fused by XLA under this jit) -------------
    x = jnp.transpose(x_nchw, (0, 2, 3, 1))                         # NHWC
    x_pad = jnp.pad(x, ((0, 0), (pad, pad), (pad, pad), (0, 0)))
    Hp, Wp = H + 2 * pad, W + 2 * pad
    # space-to-depth (pure relabeling): (b, 2p+dy, 2q+dx, c) -> (b,p,q,(dy*2+dx)*C+c)
    xs2d = x_pad.reshape(B, Hp // 2, 2, Wp // 2, 2, C)
    xs2d = xs2d.transpose(0, 1, 3, 2, 4, 5).reshape(B, Hp // 2, Wp // 2, 4 * C)
    # conv1 tap fusion done ONCE here (Kb^2=4x bytes of a tiny input) so every
    # kernel load of xs is 64-lane dense and the kernel has no concats.
    xs_taps = jnp.concatenate(
        [xs2d[:, bi:bi + OH, bj:bj + OW, :]
         for bi in range(Kb) for bj in range(Kb)], axis=-1)          # (B,OH,OW,Kc1)
    xs_flat = xs_taps.reshape(B * OHOW, Kc1).astype(op_dtype)

    # conv1 weights scattered into the (block-offset, subpixel) fused layout:
    # contraction idx = ((bi*Kb+bj)*4 + (dy*2+dx))*C + ci with kh=2bi+dy, kw=2bj+dx.
    w1eff = jnp.zeros((Kb, Kb, 2, 2, C, C), w1.dtype)
    for kh in range(K):
        for kw in range(K):
            w1eff = w1eff.at[kh // 2, kw // 2, kh % 2, kw % 2].set(w1[kh, kw])
    w1eff = w1eff.reshape(Kc1, C).astype(op_dtype)
    w2f = w2.reshape(9 * C, C2).astype(op_dtype)        # (kh,kw)-major tap stack
    b1_2d = b1.reshape(1, C).astype(jnp.float32)

    # ---- blocking: VMEM-aware batch fold, grid >= 2 steps when possible -----
    Bblk = _pick_batch_block(B, OH, OW, Kc1, C, C2, op_bytes, out_bytes)
    if (Bblk * OHOW) % 8 != 0:           # keep the (8, x) block rule legal
        Bblk = B                         # full-array block fallback
    nb = B // Bblk
    Mblk = Bblk * OHOW
    vmem_est = _vmem_block_estimate(Bblk, OH, OW, Kc1, C, C2, op_bytes, out_bytes)
    # >= 32 MiB (v6e default would otherwise cap larger tiles), capped well under
    # v5e/v6e's 128 MiB; the 24 MiB picker budget keeps blocks v7x-safe (64 MiB).
    vmem_limit = int(min(96 * 1024 * 1024, max(32 * 1024 * 1024, 2 * vmem_est)))

    kernel = functools.partial(_ds2_down_kernel, negval=float(negval),
                               n_img=Bblk, OH=OH, OW=OW)

    out_flat = pl.pallas_call(
        kernel,
        out_shape=jax.ShapeDtypeStruct((B * OHOW, C2), x_nchw.dtype),
        grid_spec=pltpu.PrefetchScalarGridSpec(
            num_scalar_prefetch=0,
            grid=(nb,),
            in_specs=[
                pl.BlockSpec((Mblk, Kc1), lambda g: (g, 0)),
                pl.BlockSpec((Kc1, C), lambda g: (0, 0)),
                pl.BlockSpec((1, C), lambda g: (0, 0)),
                pl.BlockSpec((9 * C, C2), lambda g: (0, 0)),
            ],
            out_specs=pl.BlockSpec((Mblk, C2), lambda g: (g, 0)),
            scratch_shapes=[pltpu.VMEM((OH + 2, OW + 2, C), op_dtype)],
        ),
        compiler_params=pltpu.CompilerParams(
            dimension_semantics=("parallel",),   # no cross-step state
            vmem_limit_bytes=vmem_limit,
        ),
    )(xs_flat, w1eff, b1_2d, w2f)

    out_nhwc = out_flat.reshape(B, OH, OW, C2)
    return jnp.transpose(out_nhwc, (0, 3, 1, 2))         # back to NCHW


def ds2_down_ref(x_nchw, w1, b1, w2, negval):
    """Pure-JAX reference (lax.conv) for correctness checking."""
    K = w1.shape[0]
    pad = K // 2
    x = jnp.transpose(x_nchw, (0, 2, 3, 1))
    y = lax.conv_general_dilated(
        x, w1, window_strides=(2, 2), padding=((pad, pad), (pad, pad)),
        dimension_numbers=("NHWC", "HWIO", "NHWC"),
        precision=lax.Precision.HIGHEST)
    y = y + b1
    y = jnp.where(y >= 0, y, negval * y)
    y = lax.conv_general_dilated(
        y, w2, window_strides=(1, 1), padding=((1, 1), (1, 1)),
        dimension_numbers=("NHWC", "HWIO", "NHWC"),
        precision=lax.Precision.HIGHEST)
    return jnp.transpose(y, (0, 3, 1, 2))


if __name__ == "__main__":
    B, C, H, W = 2, 4, 16, 16      # n_feat = 4
    K = 3                          # kernel_size = 3
    negval = 0.2

    key = jax.random.PRNGKey(0)
    k1, k2, k3, k4 = jax.random.split(key, 4)
    x = jax.random.normal(k1, (B, C, H, W), jnp.float32)
    # Deterministic synthetic parameters (HWIO layout).
    w1 = jax.random.normal(k2, (K, K, C, C), jnp.float32) * 0.1
    b1 = jax.random.normal(k3, (C,), jnp.float32) * 0.1
    w2 = jax.random.normal(k4, (3, 3, C, 2 * C), jnp.float32) * 0.1

    ref = jax.block_until_ready(ds2_down_ref(x, w1, b1, w2, negval))

    # f32 operand path: tight correctness gate against the lax.conv reference.
    out_f32 = jax.block_until_ready(
        ds2_down(x, w1, b1, w2, negval=negval, operand_dtype=jnp.float32))
    assert out_f32.shape == (B, 2 * C, H // 2, W // 2), out_f32.shape
    if not jnp.allclose(out_f32, ref, atol=2e-2, rtol=2e-2):
        raise AssertionError("Pallas DS2_DOWN (f32 operands) does not match reference")

    # Default bf16 operand path (MXU-native on v6e/v7x); f32 accumulation kept,
    # so only the operand casts contribute extra error.
    out_bf16 = jax.block_until_ready(ds2_down(x, w1, b1, w2, negval=negval))
    if not jnp.allclose(out_bf16, ref, atol=6e-2, rtol=6e-2):
        raise AssertionError("Pallas DS2_DOWN (bf16 operands) does not match reference")

    print("KERNEL_OK")
</pallas_src>

<mosaic_0001>
module attributes {stable_mosaic.version = 11 : i64} {
  func.func @_ds2_down_kernel(%arg0: i32, %arg1: memref<64x64xf32, #tpu.memory_space<vmem>>, %arg2: memref<64x4xf32, #tpu.memory_space<vmem>>, %arg3: memref<1x4xf32, #tpu.memory_space<vmem>>, %arg4: memref<36x8xf32, #tpu.memory_space<vmem>>, %arg5: memref<64x8xf32, #tpu.memory_space<vmem>>, %arg6: memref<10x10x4xf32, #tpu.memory_space<vmem>>) attributes {dimension_semantics = [#tpu.dimension_semantics<parallel>], iteration_bounds = array<i64: 2>, scalar_prefetch = 0 : i64, scratch_operands = 1 : i64, tpu.core_type = #tpu.core_type<tc>, window_params = [{transform_indices = @transform_0, window_bounds = array<i64: 64, 64>}, {pipeline_mode = #tpu.pipeline_mode<synchronous>, transform_indices = @transform_1, window_bounds = array<i64: 64, 4>}, {pipeline_mode = #tpu.pipeline_mode<synchronous>, transform_indices = @transform_2, window_bounds = array<i64: 1, 4>}, {pipeline_mode = #tpu.pipeline_mode<synchronous>, transform_indices = @transform_3, window_bounds = array<i64: 36, 8>}, {transform_indices = @transform_4, window_bounds = array<i64: 64, 8>}]} {
    %c0 = arith.constant 0 : index
    %c0_0 = arith.constant 0 : index
    %0 = vector.load %arg2[%c0, %c0_0] : memref<64x4xf32, #tpu.memory_space<vmem>>, vector<64x4xf32>
    %c0_1 = arith.constant 0 : index
    %c0_2 = arith.constant 0 : index
    %1 = vector.load %arg3[%c0_1, %c0_2] : memref<1x4xf32, #tpu.memory_space<vmem>>, vector<1x4xf32>
    %c0_3 = arith.constant 0 : index
    %c0_4 = arith.constant 0 : index
    %2 = vector.load %arg4[%c0_3, %c0_4] : memref<36x8xf32, #tpu.memory_space<vmem>>, vector<4x8xf32>
    %c4 = arith.constant 4 : index
    %c0_5 = arith.constant 0 : index
    %3 = vector.load %arg4[%c4, %c0_5] : memref<36x8xf32, #tpu.memory_space<vmem>>, vector<4x8xf32>
    %c8 = arith.constant 8 : index
    %c0_6 = arith.constant 0 : index
    %4 = vector.load %arg4[%c8, %c0_6] : memref<36x8xf32, #tpu.memory_space<vmem>>, vector<4x8xf32>
    %c12 = arith.constant 12 : index
    %c0_7 = arith.constant 0 : index
    %5 = vector.load %arg4[%c12, %c0_7] : memref<36x8xf32, #tpu.memory_space<vmem>>, vector<4x8xf32>
    %c16 = arith.constant 16 : index
    %c0_8 = arith.constant 0 : index
    %6 = vector.load %arg4[%c16, %c0_8] : memref<36x8xf32, #tpu.memory_space<vmem>>, vector<4x8xf32>
    %c20 = arith.constant 20 : index
    %c0_9 = arith.constant 0 : index
    %7 = vector.load %arg4[%c20, %c0_9] : memref<36x8xf32, #tpu.memory_space<vmem>>, vector<4x8xf32>
    %c24 = arith.constant 24 : index
    %c0_10 = arith.constant 0 : index
    %8 = vector.load %arg4[%c24, %c0_10] : memref<36x8xf32, #tpu.memory_space<vmem>>, vector<4x8xf32>
    %c28 = arith.constant 28 : index
    %c0_11 = arith.constant 0 : index
    %9 = vector.load %arg4[%c28, %c0_11] : memref<36x8xf32, #tpu.memory_space<vmem>>, vector<4x8xf32>
    %c32 = arith.constant 32 : index
    %c0_12 = arith.constant 0 : index
    %10 = vector.load %arg4[%c32, %c0_12] : memref<36x8xf32, #tpu.memory_space<vmem>>, vector<4x8xf32>
    %c0_13 = arith.constant 0 : index
    %c0_14 = arith.constant 0 : index
    %11 = vector.load %arg1[%c0_13, %c0_14] : memref<64x64xf32, #tpu.memory_space<vmem>>, vector<64x64xf32>
    %cst = arith.constant dense<0.000000e+00> : vector<64x4xf32>
    %12 = tpu.matmul %11, %0, %cst {dimension_numbers = #tpu.dot_dimension_numbers<[1], [0], [0], [1], [0, 0, 1, 1], [], []>} : vector<64x64xf32>, vector<64x4xf32>, vector<64x4xf32> -> vector<64x4xf32>
    %13 = vector.broadcast %1 : vector<1x4xf32> to vector<64x4xf32>
    %14 = arith.addf %12, %13 : vector<64x4xf32>
    %cst_15 = arith.constant 0.000000e+00 : f32
    %15 = vector.broadcast %cst_15 : f32 to vector<64x4xf32>
    %16 = arith.cmpf oge, %14, %15 : vector<64x4xf32>
    %cst_16 = arith.constant 2.000000e-01 : f32
    %17 = vector.broadcast %cst_16 : f32 to vector<64x4xf32>
    %18 = arith.mulf %17, %14 : vector<64x4xf32>
    %19 = arith.select %16, %14, %18 : vector<64x4xi1>, vector<64x4xf32>
    %cst_17 = arith.constant 0.000000e+00 : f32
    %20 = vector.broadcast %cst_17 : f32 to vector<10x10x4xf32>
    %c0_18 = arith.constant 0 : index
    %c0_19 = arith.constant 0 : index
    %c0_20 = arith.constant 0 : index
    %21 = vector.load %arg6[%c0_18, %c0_19, %c0_20] : memref<10x10x4xf32, #tpu.memory_space<vmem>>, vector<10x10x4xf32>
    tpu.vector_store %arg6[%c0_18, %c0_19, %c0_20], %20 {strides = array<i32>} : memref<10x10x4xf32, #tpu.memory_space<vmem>>, vector<10x10x4xf32>,
    %22 = vector.shape_cast %19 : vector<64x4xf32> to vector<8x8x4xf32>
    %c1 = arith.constant 1 : index
    %c1_21 = arith.constant 1 : index
    %c0_22 = arith.constant 0 : index
    %23 = vector.load %arg6[%c1, %c1_21, %c0_22] : memref<10x10x4xf32, #tpu.memory_space<vmem>>, vector<8x8x4xf32>
    tpu.vector_store %arg6[%c1, %c1_21, %c0_22], %22 {strides = array<i32>} : memref<10x10x4xf32, #tpu.memory_space<vmem>>, vector<8x8x4xf32>,
    %cst_23 = arith.constant 0.000000e+00 : f32
    %24 = vector.broadcast %cst_23 : f32 to vector<64x8xf32>
    %c0_24 = arith.constant 0 : index
    %c0_25 = arith.constant 0 : index
    %c0_26 = arith.constant 0 : index
    %25 = vector.load %arg6[%c0_24, %c0_25, %c0_26] : memref<10x10x4xf32, #tpu.memory_space<vmem>>, vector<8x8x4xf32>
    %26 = vector.shape_cast %25 : vector<8x8x4xf32> to vector<64x4xf32>
    %cst_27 = arith.constant dense<0.000000e+00> : vector<64x8xf32>
    %27 = tpu.matmul %26, %2, %cst_27 {dimension_numbers = #tpu.dot_dimension_numbers<[1], [0], [0], [1], [0, 0, 1, 1], [], []>} : vector<64x4xf32>, vector<4x8xf32>, vector<64x8xf32> -> vector<64x8xf32>
    %28 = arith.addf %24, %27 : vector<64x8xf32>
    %c0_28 = arith.constant 0 : index
    %c1_29 = arith.constant 1 : index
    %c0_30 = arith.constant 0 : index
    %29 = vector.load %arg6[%c0_28, %c1_29, %c0_30] : memref<10x10x4xf32, #tpu.memory_space<vmem>>, vector<8x8x4xf32>
    %30 = vector.shape_cast %29 : vector<8x8x4xf32> to vector<64x4xf32>
    %cst_31 = arith.constant dense<0.000000e+00> : vector<64x8xf32>
    %31 = tpu.matmul %30, %3, %cst_31 {dimension_numbers = #tpu.dot_dimension_numbers<[1], [0], [0], [1], [0, 0, 1, 1], [], []>} : vector<64x4xf32>, vector<4x8xf32>, vector<64x8xf32> -> vector<64x8xf32>
    %32 = arith.addf %28, %31 : vector<64x8xf32>
    %c0_32 = arith.constant 0 : index
    %c2 = arith.constant 2 : index
    %c0_33 = arith.constant 0 : index
    %33 = vector.load %arg6[%c0_32, %c2, %c0_33] : memref<10x10x4xf32, #tpu.memory_space<vmem>>, vector<8x8x4xf32>
    %34 = vector.shape_cast %33 : vector<8x8x4xf32> to vector<64x4xf32>
    %cst_34 = arith.constant dense<0.000000e+00> : vector<64x8xf32>
    %35 = tpu.matmul %34, %4, %cst_34 {dimension_numbers = #tpu.dot_dimension_numbers<[1], [0], [0], [1], [0, 0, 1, 1], [], []>} : vector<64x4xf32>, vector<4x8xf32>, vector<64x8xf32> -> vector<64x8xf32>
    %36 = arith.addf %32, %35 : vector<64x8xf32>
    %c1_35 = arith.constant 1 : index
    %c0_36 = arith.constant 0 : index
    %c0_37 = arith.constant 0 : index
    %37 = vector.load %arg6[%c1_35, %c0_36, %c0_37] : memref<10x10x4xf32, #tpu.memory_space<vmem>>, vector<8x8x4xf32>
    %38 = vector.shape_cast %37 : vector<8x8x4xf32> to vector<64x4xf32>
    %cst_38 = arith.constant dense<0.000000e+00> : vector<64x8xf32>
    %39 = tpu.matmul %38, %5, %cst_38 {dimension_numbers = #tpu.dot_dimension_numbers<[1], [0], [0], [1], [0, 0, 1, 1], [], []>} : vector<64x4xf32>, vector<4x8xf32>, vector<64x8xf32> -> vector<64x8xf32>
    %40 = arith.addf %36, %39 : vector<64x8xf32>
    %c1_39 = arith.constant 1 : index
    %c1_40 = arith.constant 1 : index
    %c0_41 = arith.constant 0 : index
    %41 = vector.load %arg6[%c1_39, %c1_40, %c0_41] : memref<10x10x4xf32, #tpu.memory_space<vmem>>, vector<8x8x4xf32>
    %42 = vector.shape_cast %41 : vector<8x8x4xf32> to vector<64x4xf32>
    %cst_42 = arith.constant dense<0.000000e+00> : vector<64x8xf32>
    %43 = tpu.matmul %42, %6, %cst_42 {dimension_numbers = #tpu.dot_dimension_numbers<[1], [0], [0], [1], [0, 0, 1, 1], [], []>} : vector<64x4xf32>, vector<4x8xf32>, vector<64x8xf32> -> vector<64x8xf32>
    %44 = arith.addf %40, %43 : vector<64x8xf32>
    %c1_43 = arith.constant 1 : index
    %c2_44 = arith.constant 2 : index
    %c0_45 = arith.constant 0 : index
    %45 = vector.load %arg6[%c1_43, %c2_44, %c0_45] : memref<10x10x4xf32, #tpu.memory_space<vmem>>, vector<8x8x4xf32>
    %46 = vector.shape_cast %45 : vector<8x8x4xf32> to vector<64x4xf32>
    %cst_46 = arith.constant dense<0.000000e+00> : vector<64x8xf32>
    %47 = tpu.matmul %46, %7, %cst_46 {dimension_numbers = #tpu.dot_dimension_numbers<[1], [0], [0], [1], [0, 0, 1, 1], [], []>} : vector<64x4xf32>, vector<4x8xf32>, vector<64x8xf32> -> vector<64x8xf32>
    %48 = arith.addf %44, %47 : vector<64x8xf32>
    %c2_47 = arith.constant 2 : index
    %c0_48 = arith.constant 0 : index
    %c0_49 = arith.constant 0 : index
    %49 = vector.load %arg6[%c2_47, %c0_48, %c0_49] : memref<10x10x4xf32, #tpu.memory_space<vmem>>, vector<8x8x4xf32>
    %50 = vector.shape_cast %49 : vector<8x8x4xf32> to vector<64x4xf32>
    %cst_50 = arith.constant dense<0.000000e+00> : vector<64x8xf32>
    %51 = tpu.matmul %50, %8, %cst_50 {dimension_numbers = #tpu.dot_dimension_numbers<[1], [0], [0], [1], [0, 0, 1, 1], [], []>} : vector<64x4xf32>, vector<4x8xf32>, vector<64x8xf32> -> vector<64x8xf32>
    %52 = arith.addf %48, %51 : vector<64x8xf32>
    %c2_51 = arith.constant 2 : index
    %c1_52 = arith.constant 1 : index
    %c0_53 = arith.constant 0 : index
    %53 = vector.load %arg6[%c2_51, %c1_52, %c0_53] : memref<10x10x4xf32, #tpu.memory_space<vmem>>, vector<8x8x4xf32>
    %54 = vector.shape_cast %53 : vector<8x8x4xf32> to vector<64x4xf32>
    %cst_54 = arith.constant dense<0.000000e+00> : vector<64x8xf32>
    %55 = tpu.matmul %54, %9, %cst_54 {dimension_numbers = #tpu.dot_dimension_numbers<[1], [0], [0], [1], [0, 0, 1, 1], [], []>} : vector<64x4xf32>, vector<4x8xf32>, vector<64x8xf32> -> vector<64x8xf32>
    %56 = arith.addf %52, %55 : vector<64x8xf32>
    %c2_55 = arith.constant 2 : index
    %c2_56 = arith.constant 2 : index
    %c0_57 = arith.constant 0 : index
    %57 = vector.load %arg6[%c2_55, %c2_56, %c0_57] : memref<10x10x4xf32, #tpu.memory_space<vmem>>, vector<8x8x4xf32>
    %58 = vector.shape_cast %57 : vector<8x8x4xf32> to vector<64x4xf32>
    %cst_58 = arith.constant dense<0.000000e+00> : vector<64x8xf32>
    %59 = tpu.matmul %58, %10, %cst_58 {dimension_numbers = #tpu.dot_dimension_numbers<[1], [0], [0], [1], [0, 0, 1, 1], [], []>} : vector<64x4xf32>, vector<4x8xf32>, vector<64x8xf32> -> vector<64x8xf32>
    %60 = arith.addf %56, %59 : vector<64x8xf32>
    %c0_59 = arith.constant 0 : index
    %c0_60 = arith.constant 0 : index
    %61 = vector.load %arg5[%c0_59, %c0_60] : memref<64x8xf32, #tpu.memory_space<vmem>>, vector<64x8xf32>
    tpu.vector_store %arg5[%c0_59, %c0_60], %60 {strides = array<i32>} : memref<64x8xf32, #tpu.memory_space<vmem>>, vector<64x8xf32>,
    return
  }
  func.func @transform_0(%arg0: i32) -> (i32, i32) {
    %c0_i32 = arith.constant 0 : i32
    %c0_i32_0 = arith.constant 0 : i32
    return %arg0, %c0_i32 : i32, i32
  }
  func.func @transform_1(%arg0: i32) -> (i32, i32) {
    %c0_i32 = arith.constant 0 : i32
    %c0_i32_0 = arith.constant 0 : i32
    %c0_i32_1 = arith.constant 0 : i32
    return %c0_i32, %c0_i32_0 : i32, i32
  }
  func.func @transform_2(%arg0: i32) -> (i32, i32) {
    %c0_i32 = arith.constant 0 : i32
    %c0_i32_0 = arith.constant 0 : i32
    %c0_i32_1 = arith.constant 0 : i32
    return %c0_i32, %c0_i32_0 : i32, i32
  }
  func.func @transform_3(%arg0: i32) -> (i32, i32) {
    %c0_i32 = arith.constant 0 : i32
    %c0_i32_0 = arith.constant 0 : i32
    %c0_i32_1 = arith.constant 0 : i32
    return %c0_i32, %c0_i32_0 : i32, i32
  }
  func.func @transform_4(%arg0: i32) -> (i32, i32) {
    %c0_i32 = arith.constant 0 : i32
    %c0_i32_0 = arith.constant 0 : i32
    return %arg0, %c0_i32 : i32, i32
  }
}

</mosaic_0001>

<bundles_post_ra>
// kernel: ds2_down.1
= control target key start
LH: loop header
LB: loop body
LE: loop exit
PB: predicated region body
PF: predicated region fallthrough
CT: control target
= control target key end

     0   :  { %s2278_s15 = smov 0   ;;  %s2551_s0 = inlined_call_operand.vmem [shape: f32[128,64], index: 0, kind: input, shape index: {}]   ;;  %s2552_s1 = inlined_call_operand.vmem [shape: f32[64,4], index: 1, kind: input, shape index: {}]   ;;  %s2553_s2 = inlined_call_operand.vmem [shape: f32[1,4], index: 2, kind: input, shape index: {}]   ;;  %s2554_s3 = inlined_call_operand.vmem [shape: f32[36,8], index: 3, kind: input, shape index: {}]   ;;  %s2555_s4 = inlined_call_operand.vmem [shape: f32[128,8], index: 4, kind: output, shape index: {}]  }
   0x1 LB: > { %s1801_s16 = sadd.s32 4294967295, %s2250_s15   ;;  %p1805_p0 = scmp.ge.s32.totalorder %s2250_s15, 1  ;;  %s2250_s15 = sphi %s2278_s15, %s14_s15  }
   0x2   : > { %p163_p1 = scmp.lt.s32.totalorder %s2250_s15, 3 }
   0x4   : > { %p164_p2 = pnand %p1805_p0, %p163_p1 }
   0x5   : > { %v201_v0 = vld [vmem:[%s2552_s1] sm:$0xff] (!%p164_p2)  ;;  %v202_v1 = vld [vmem:[%s2552_s1 + $0x8] sm:$0xff] (!%p164_p2)  ;;  %v203_v2 = vld [vmem:[%s2552_s1 + $0x10] sm:$0xff] (!%p164_p2)  ;;  %s1806_s23 = sshll.u32 (!%p164_p2), %s1801_s16, 3  ;;  %vm233_vm0 = vcmask (!%p164_p2), 523264   ;;  %vm387_vm1 = vcmask (!%p164_p2), 31744  }
   0x6   : > { %167 = sbr.rel (%p164_p2) target bundleno = 560 (0x230), region = 36  ;;  %v2153_v3 = vpack.c.bf16 (!%p164_p2), %v202_v1, %v201_v0  ;;  %v204_v4 = vld [vmem:[%s2552_s1 + $0x18] sm:$0xff] (!%p164_p2)  ;;  %p190_p3 = scmp.lt.s32.totalorder (!%p164_p2), %s1806_s23, 15  ;;  %v205_v6 = vld [vmem:[%s2552_s1 + $0x20] sm:$0xff] (!%p164_p2)  ;;  %v206_v7 = vld [vmem:[%s2552_s1 + $0x28] sm:$0xff] (!%p164_p2)  ;;  %vm389_vm2 = vcmask (!%p164_p2), 25600  }
   0x7   : > { %v2157_v5 = vpack.c.bf16 (!%p164_p2), %v204_v4, %v203_v2  ;;  %v2161_v8 = vpack.c.bf16 (!%p164_p2), %v206_v7, %v205_v6  ;;  %v207_v9 = vld [vmem:[%s2552_s1 + $0x30] sm:$0xff] (!%p164_p2)  ;;  %v208_v10 = vld [vmem:[%s2552_s1 + $0x38] sm:$0xff] (!%p164_p2)  ;;  %v2252_v20 = vmov (!%p164_p2), 0.0   ;;  %v211_v21 = vld [vmem:[%s2554_s3 + $0x4] sm:$0xf] (!%p164_p2)  ;;  %vm458_vm3 = vcmask (!%p164_p2), 1043456  }
   0x8   : > { %2154 = vmatprep.subr.bf16.mxu0 (!%p164_p2), %v2153_v3  ;;  %v2165_v12 = vpack.c.bf16 (!%p164_p2), %v208_v10, %v207_v9  ;;  %393 = vst.msk [vmem:[#allocation2 + $0x20] sm:$0xff] (!%p164_p2), %vm387_vm1, %v2252_v20  ;;  %388 = vst.msk [vmem:[#allocation2] sm:$0xff] (!%p164_p2), %vm387_vm1, %v2252_v20  ;;  %v2355_v23 = vld [vmem:[%s2554_s3 + $0xc] sm:$0xf] (!%p164_p2)  ;;  %v2364_v24 = vld [vmem:[%s2554_s3 + $0x10] sm:$0xf] (!%p164_p2) }
   0x9   : > { %2156 = vmatpush3.bf16.msra.mxu0 (!%p164_p2), %v2153_v3  ;;  %394 = vst.msk [vmem:[#allocation2 + $0x28] sm:$0x3] (!%p164_p2), %vm389_vm2, %v2252_v20  ;;  %390 = vst.msk [vmem:[#allocation2 + $0x8] sm:$0x3] (!%p164_p2), %vm389_vm2, %v2252_v20  ;;  %2169 = vmatprep.subr.msk.mxu1 (!%p164_p2), %vm458_vm3, %v2355_v23  ;;  %v210_v25 = vld [vmem:[%s2554_s3] sm:$0xf] (!%p164_p2) }
   0xa   : > { %2158 = vmatprep.subr.bf16.mxu0 (!%p164_p2), %v2157_v5  ;;  %391 = vst.msk [vmem:[#allocation2 + $0x10] sm:$0xff] (!%p164_p2), %vm387_vm1, %v2252_v20  ;;  %395 = vst.msk [vmem:[#allocation2 + $0x30] sm:$0xff] (!%p164_p2), %vm387_vm1, %v2252_v20  ;;  %2170 = vmatpush3.msk.msra.mxu1 (!%p164_p2), %vm458_vm3, %v2355_v23  ;;  %v1810_v26 = vld [vmem:[%s2553_s2] ss:$0 sm:$0xff] (!%p164_p2)  ;;  %v212_v56 = vld [vmem:[%s2554_s3 + $0x8] sm:$0xf] (!%p164_p2) }
   0xb   : > { %392 = vst.msk [vmem:[#allocation2 + $0x18] sm:$0x3] (!%p164_p2), %vm389_vm2, %v2252_v20  ;;  %396 = vst.msk [vmem:[#allocation2 + $0x38] sm:$0x3] (!%p164_p2), %vm389_vm2, %v2252_v20  ;;  %2083 = vmatprep.subr.msk.mxu1 (!%p164_p2), %vm458_vm3, %v2364_v24  ;;  %v215_v4 = vld [vmem:[%s2554_s3 + $0x14] sm:$0xf] (!%p164_p2) }
   0xc   : > { %397 = vst.msk [vmem:[#allocation2 + $0x40] sm:$0xff] (!%p164_p2), %vm387_vm1, %v2252_v20  ;;  %399 = vst.msk [vmem:[#allocation2 + $0x50] sm:$0xff] (!%p164_p2), %vm387_vm1, %v2252_v20  ;;  %vm1736_vm12 = vcmask (!%p164_p2), 64512  }
   0xd   : > { %s2557_s23 = smov (!%p190_p3, %s1806_s23), 15  ;;  %2160 = vmatpush3.bf16.msra.mxu0 %v2157_v5  ;;  %398 = vst.msk [vmem:[#allocation2 + $0x48] sm:$0x3] %vm389_vm2, %v2252_v20  ;;  %400 = vst.msk [vmem:[#allocation2 + $0x58] sm:$0x3] %vm389_vm2, %v2252_v20 }
   0xe   : > { %s1807_s30 = sshll.u32 %s2557_s23, 3  ;;  %2162 = vmatprep.subr.bf16.mxu0 %v2161_v8  ;;  %401 = vst.msk [vmem:[#allocation2 + $0x60] sm:$0xff] %vm387_vm1, %v2252_v20  ;;  %403 = vst.msk [vmem:[#allocation2 + $0x70] sm:$0xff] %vm387_vm1, %v2252_v20 }
   0xf   : > { %s193_s11 = scalar_lea.vmem %s2551_s0, %s1807_s30  ;;  %402 = vst.msk [vmem:[#allocation2 + $0x68] sm:$0x3] %vm389_vm2, %v2252_v20  ;;  %404 = vst.msk [vmem:[#allocation2 + $0x78] sm:$0x3] %vm389_vm2, %v2252_v20  ;;  %v418_v5 = vld [vmem:[#allocation2] sm:$0xff] }
  0x10   : > { %v219_v11 = vld [vmem:[%s193_s11] sm:$0xff]  ;;  %v220_v13 = vld [vmem:[%s193_s11 + $0x8] sm:$0xff]  ;;  %v221_v14 = vld [vmem:[%s193_s11 + $0x10] sm:$0xff]  ;;  %405 = vst.msk [vmem:[#allocation2 + $0x80] sm:$0xff] %vm387_vm1, %v2252_v20 }
  0x11   : > { %2015 = vmatprep.mubr.msk.f32.mxu0 %vm233_vm0, %v219_v11  ;;  %2164 = vmatpush3.bf16.msra.mxu0 %v2161_v8  ;;  %v222_v15 = vld [vmem:[%s193_s11 + $0x18] sm:$0xff]  ;;  %v223_v16 = vld [vmem:[%s193_s11 + $0x20] sm:$0xff]  ;;  %v224_v17 = vld [vmem:[%s193_s11 + $0x28] sm:$0xff]  ;;  %406 = vst.msk [vmem:[#allocation2 + $0x88] sm:$0x3] %vm389_vm2, %v2252_v20 }
  0x12   : > { %2166 = vmatprep.subr.bf16.mxu0 %v2165_v12  ;;  %v225_v18 = vld [vmem:[%s193_s11 + $0x30] sm:$0xff]  ;;  %v226_v19 = vld [vmem:[%s193_s11 + $0x38] sm:$0xff]  ;;  %407 = vst.msk [vmem:[#allocation2 + $0x90] sm:$0xff] %vm387_vm1, %v2252_v20  ;;  %v426_v22 = vld [vmem:[#allocation2 + $0x1] sm:$0xff]  ;;  %s199_s11 = scalar_lea.vmem %s2555_s4, %s1807_s30 }
  0x13   : > { %408 = vst.msk [vmem:[#allocation2 + $0x98] sm:$0x3] %vm389_vm2, %v2252_v20  ;;  %v216_v11 = vld [vmem:[%s2554_s3 + $0x18] sm:$0xf] }
  0x15   : > { %2168 = vmatpush3.bf16.msra.mxu0 %v2165_v12 }
  0x16   : > { %2027 = vmatprep.subr.msk.mxu0 %vm458_vm3, %v211_v21 }
  0x18   : > { %2016 = vmatmul.mubr.msk.f32.vlgmr.msra.gmra.mrb[0].mxu0 %vm233_vm0, %v220_v13 }
  0x19   : > { %2018 = vmatprep.mubr.msk.f32.mxu0 %vm233_vm0, %v221_v14  ;;  %2028 = vmatpush3.msk.msra.mxu0 %vm458_vm3, %v211_v21  ;;  %v699_v14 = vld [vmem:[#allocation2 + $0x2] sm:$0xff] }
  0x1a   : > { %2041 = vmatprep.subr.msk.mxu0 %vm458_vm3, %v210_v25 }
  0x1c   : > { %2019 = vmatmul.mubr.msk.f32.gmra.mrb[2].mxu0 %vm233_vm0, %v222_v15 }
  0x1d   : > { %2021 = vmatprep.mubr.msk.f32.mxu0 %vm233_vm0, %v223_v16 }
  0x20   : > { %2022 = vmatmul.mubr.msk.f32.gmra.mrb[4].mxu0 %vm233_vm0, %v224_v17 }
  0x21   : > { %2024 = vmatprep.mubr.msk.f32.mxu0 %vm233_vm0, %v225_v18  ;;  %v217_v18 = vld [vmem:[%s2554_s3 + $0x1c] sm:$0xf] }
  0x24   : > { %2025 = vmatmul.mubr.msk.f32.gmra.mrb[6].mxu0 %vm233_vm0, %v226_v19 }
  0x25   : > { %2029 = vmatprep.mubr.msk.f32.mxu0 %vm387_vm1, %v426_v22 }
  0xeb   : > { %v2017_v27 = vpop.f32.mrb[0].mxu0 }
  0xec   : > { %v330_v28 = vadd.f32 %v2017_v27, %v1810_v26  ;;  %v324_v29 = vpop.f32.mrb[1].mxu0  ;;  %v1447_v27 = vld [vmem:[#allocation2 + $0x91] sm:$0xff] }
  0xed   : > { %v325_v30 = vadd.f32 %v1810_v26, %v324_v29 }
  0xee   : > { %vm364_vm4 = vcmp.ge.f32.partialorder %v330_v28, 0.0  ;;  %v372_v31 = vmul.f32 0.2, %v330_v28 }
  0xef   : > { %vm363_vm5 = vcmp.ge.f32.partialorder %v325_v30, 0.0  ;;  %v371_v32 = vmul.f32 0.2, %v325_v30  ;;  %v2020_v33 = vpop.f32.mrb[2].mxu0 }
  0xf0   : > { %v380_v34 = vsel %vm364_vm4, %v330_v28, %v372_v31  ;;  %v340_v35 = vadd.f32 %v2020_v33, %v1810_v26  ;;  %v334_v36 = vpop.f32.mrb[3].mxu0  ;;  %v1595_v28 = vld [vmem:[#allocation2 + $0x92] sm:$0xff] }
  0xf1   : > { %411 = vst.msk [vmem:[#allocation2 + $0x21] sm:$0xff] %vm387_vm1, %v380_v34  ;;  %v379_v37 = vsel %vm363_vm5, %v325_v30, %v371_v32  ;;  %v335_v38 = vadd.f32 %v1810_v26, %v334_v36 }
  0xf2   : > { %410 = vst.msk [vmem:[#allocation2 + $0x11] sm:$0xff] %vm387_vm1, %v379_v37  ;;  %vm366_vm6 = vcmp.ge.f32.partialorder %v340_v35, 0.0  ;;  %v374_v39 = vmul.f32 0.2, %v340_v35 }
  0xf3   : > { %vm365_vm7 = vcmp.ge.f32.partialorder %v335_v38, 0.0  ;;  %v373_v40 = vmul.f32 0.2, %v335_v38  ;;  %v2023_v41 = vpop.f32.mrb[4].mxu0 }
  0xf4   : > { %v382_v42 = vsel %vm366_vm6, %v340_v35, %v374_v39  ;;  %v350_v43 = vadd.f32 %v2023_v41, %v1810_v26  ;;  %v344_v44 = vpop.f32.mrb[5].mxu0 }
  0xf5   : > { %413 = vst.msk [vmem:[#allocation2 + $0x41] sm:$0xff] %vm387_vm1, %v382_v42  ;;  %v381_v45 = vsel %vm365_vm7, %v335_v38, %v373_v40  ;;  %v345_v46 = vadd.f32 %v1810_v26, %v344_v44 }
  0xf6   : > { %412 = vst.msk [vmem:[#allocation2 + $0x31] sm:$0xff] %vm387_vm1, %v381_v45  ;;  %vm368_vm8 = vcmp.ge.f32.partialorder %v350_v43, 0.0  ;;  %v376_v47 = vmul.f32 0.2, %v350_v43 }
  0xf7   : > { %vm367_vm9 = vcmp.ge.f32.partialorder %v345_v46, 0.0  ;;  %v375_v48 = vmul.f32 0.2, %v345_v46  ;;  %v2026_v49 = vpop.f32.mrb[6].mxu0 }
  0xf8   : > { %v384_v50 = vsel %vm368_vm8, %v350_v43, %v376_v47  ;;  %v360_v51 = vadd.f32 %v2026_v49, %v1810_v26  ;;  %v354_v52 = vpop.f32.mrb[7].mxu0  ;;  %v2385_v58 = vld [vmem:[#allocation2 + $0x21] sm:$0xff] }
  0xf9   : > { %415 = vst.msk [vmem:[#allocation2 + $0x61] sm:$0xff] %vm387_vm1, %v384_v50  ;;  %v383_v53 = vsel %vm367_vm9, %v345_v46, %v375_v48  ;;  %v355_v54 = vadd.f32 %v1810_v26, %v354_v52  ;;  %v427_v55 = vld [vmem:[#allocation2 + $0x11] sm:$0xff]  ;;  %v420_v10 = vld [vmem:[#allocation2 + $0x20] sm:$0xff] }
  0xfa   : > { %414 = vst.msk [vmem:[#allocation2 + $0x51] sm:$0xff] %vm387_vm1, %v383_v53  ;;  %vm370_vm10 = vcmp.ge.f32.partialorder %v360_v51, 0.0  ;;  %v378_v57 = vmul.f32 0.2, %v360_v51  ;;  %2030 = vmatmul.mubr.msk.f32.vlgmr.msra.gmra.mrb[8].mxu0 %vm387_vm1, %v427_v55  ;;  %v419_v9 = vld [vmem:[#allocation2 + $0x10] sm:$0xff]  ;;  %v701_v17 = vld [vmem:[#allocation2 + $0x22] sm:$0xff] }
  0xfb   : > { %vm369_vm11 = vcmp.ge.f32.partialorder %v355_v54, 0.0  ;;  %v377_v59 = vmul.f32 0.2, %v355_v54  ;;  %2032 = vmatprep.mubr.msk.f32.mxu0 %vm387_vm1, %v2385_v58  ;;  %2042 = vmatpush3.msk.msra.mxu0 %vm458_vm3, %v210_v25  ;;  %v1143_v16 = vld [vmem:[#allocation2 + $0x12] sm:$0xff]  ;;  %v218_v25 = vld [vmem:[%s2554_s3 + $0x20] sm:$0xf] }
  0xfc   : > { %v386_v60 = vsel %vm370_vm10, %v360_v51, %v378_v57  ;;  %2055 = vmatprep.subr.msk.mxu0 %vm458_vm3, %v212_v56  ;;  %v2397_v63 = vld [vmem:[#allocation2 + $0x41] sm:$0xff]  ;;  %v1299_v26 = vld [vmem:[#allocation2 + $0x90] sm:$0xff] }
  0xfd   : > { %417 = vst.msk [vmem:[#allocation2 + $0x81] sm:$0xff] %vm387_vm1, %v386_v60  ;;  %v385_v61 = vsel %vm369_vm11, %v355_v54, %v377_v59  ;;  %v2392_v62 = vld [vmem:[#allocation2 + $0x31] sm:$0xff]  ;;  %v422_v13 = vld [vmem:[#allocation2 + $0x40] sm:$0xff] }
  0xfe   : > { %416 = vst.msk [vmem:[#allocation2 + $0x71] sm:$0xff] %vm387_vm1, %v385_v61  ;;  %2033 = vmatmul.mubr.msk.f32.gmra.mrb[10].mxu0 %vm387_vm1, %v2392_v62  ;;  %v421_v12 = vld [vmem:[#allocation2 + $0x30] sm:$0xff]  ;;  %v703_v20 = vld [vmem:[#allocation2 + $0x42] sm:$0xff] }
  0xff   : > { %2035 = vmatprep.mubr.msk.f32.mxu0 %vm387_vm1, %v2397_v63  ;;  %v1145_v19 = vld [vmem:[#allocation2 + $0x32] sm:$0xff] }
 0x100   : > { %v2409_v2 = vld [vmem:[#allocation2 + $0x61] sm:$0xff] }
 0x101   : > { %v2401_v0 = vld [vmem:[#allocation2 + $0x51] sm:$0xff]  ;;  %v2411_v3 = vld [vmem:[#allocation2 + $0x60] sm:$0xff] }
 0x102   : > { %v2403_v1 = vld [vmem:[#allocation2 + $0x50] sm:$0xff]  ;;  %2036 = vmatmul.mubr.msk.f32.gmra.mrb[12].mxu0 %vm387_vm1, %v2401_v0  ;;  %v705_v22 = vld [vmem:[#allocation2 + $0x62] sm:$0xff] }
 0x103   : > { %2077 = vmatprep.mubr.msk.f32.mxu1 %vm387_vm1, %v2403_v1  ;;  %2038 = vmatprep.mubr.msk.f32.mxu0 %vm387_vm1, %v2409_v2  ;;  %v1147_v21 = vld [vmem:[#allocation2 + $0x52] sm:$0xff] }
 0x104   : > { %2078 = vmatmul.mubr.msk.f32.vlgmr.msra.gmra.mrb[0].mxu1 %vm387_vm1, %v2411_v3  ;;  %v2431_v8 = vld [vmem:[#allocation2 + $0x80] sm:$0xff] }
 0x105   : > { %2084 = vmatpush3.msk.msra.mxu1 %vm458_vm3, %v2364_v24  ;;  %v2422_v6 = vld [vmem:[#allocation2 + $0x71] sm:$0xff]  ;;  %v1002_v15 = vld [vmem:[#allocation2 + $0x81] sm:$0xff] }
 0x106   : > { %v2424_v7 = vld [vmem:[#allocation2 + $0x70] sm:$0xff]  ;;  %2097 = vmatprep.subr.msk.mxu1 %vm458_vm3, %v215_v4  ;;  %2039 = vmatmul.mubr.msk.f32.gmra.mrb[14].mxu0 %vm387_vm1, %v2422_v6  ;;  %v1150_v24 = vld [vmem:[#allocation2 + $0x82] sm:$0xff] }
 0x107   : > { %2080 = vmatprep.mubr.msk.f32.mxu1 %vm387_vm1, %v2424_v7  ;;  %2043 = vmatprep.mubr.msk.f32.mxu0 %vm387_vm1, %v418_v5 }
 0x108   : > { %2081 = vmatmul.mubr.msk.f32.gmra.mrb[2].mxu1 %vm387_vm1, %v2431_v8 }
 0x109   : > { %2085 = vmatprep.mubr.msk.f32.mxu1 %vm387_vm1, %v427_v55 }
 0x10a   : > { %2044 = vmatmul.mubr.msk.f32.vlgmr.msra.gmra.mrb[8].mxu0 %vm387_vm1, %v419_v9 }
 0x10b   : > { %2046 = vmatprep.mubr.msk.f32.mxu0 %vm387_vm1, %v420_v10  ;;  %2056 = vmatpush3.msk.msra.mxu0 %vm458_vm3, %v212_v56 }
 0x10c   : > { %2086 = vmatmul.mubr.msk.f32.vlgmr.msra.gmra.mrb[4].mxu1 %vm387_vm1, %v2385_v58  ;;  %2069 = vmatprep.subr.msk.mxu0 %vm458_vm3, %v2355_v23 }
 0x10d   : > { %2098 = vmatpush3.msk.msra.mxu1 %vm458_vm3, %v215_v4  ;;  %2088 = vmatprep.mubr.msk.f32.mxu1 %vm387_vm1, %v2392_v62 }
 0x10e   : > { %2111 = vmatprep.subr.msk.mxu1 %vm458_vm3, %v216_v11  ;;  %2047 = vmatmul.mubr.msk.f32.gmra.mrb[10].mxu0 %vm387_vm1, %v421_v12 }
 0x10f   : > { %2049 = vmatprep.mubr.msk.f32.mxu0 %vm387_vm1, %v422_v13 }
 0x110   : > { %2089 = vmatmul.mubr.msk.f32.gmra.mrb[6].mxu1 %vm387_vm1, %v2397_v63 }
 0x111   : > { %2091 = vmatprep.mubr.msk.f32.mxu1 %vm387_vm1, %v2401_v0 }
 0x112   : > { %2050 = vmatmul.mubr.msk.f32.gmra.mrb[12].mxu0 %vm387_vm1, %v2403_v1 }
 0x113   : > { %2052 = vmatprep.mubr.msk.f32.mxu0 %vm387_vm1, %v2411_v3 }
 0x114   : > { %2092 = vmatmul.mubr.msk.f32.gmra.mrb[0].mxu1 %vm387_vm1, %v2409_v2 }
 0x115   : > { %2094 = vmatprep.mubr.msk.f32.mxu1 %vm387_vm1, %v2422_v6 }
 0x116   : > { %2053 = vmatmul.mubr.msk.f32.gmra.mrb[14].mxu0 %vm387_vm1, %v2424_v7 }
 0x117   : > { %2057 = vmatprep.mubr.msk.f32.mxu0 %vm387_vm1, %v699_v14 }
 0x118   : > { %2095 = vmatmul.mubr.msk.f32.gmra.mrb[2].mxu1 %vm387_vm1, %v1002_v15 }
 0x119   : > { %2099 = vmatprep.mubr.msk.f32.mxu1 %vm387_vm1, %v1143_v16 }
 0x11a   : > { %2058 = vmatmul.mubr.msk.f32.vlgmr.msra.gmra.mrb[8].mxu0 %vm387_vm1, %v1143_v16 }
 0x11b   : > { %2060 = vmatprep.mubr.msk.f32.mxu0 %vm387_vm1, %v701_v17  ;;  %2070 = vmatpush3.msk.msra.mxu0 %vm458_vm3, %v2355_v23  ;;  %v1149_v23 = vld [vmem:[#allocation2 + $0x72] sm:$0xff] }
 0x11c   : > { %2100 = vmatmul.mubr.msk.f32.vlgmr.msra.gmra.mrb[4].mxu1 %vm387_vm1, %v701_v17 }
 0x11d   : > { %2112 = vmatpush3.msk.msra.mxu1 %vm458_vm3, %v216_v11  ;;  %2102 = vmatprep.mubr.msk.f32.mxu1 %vm387_vm1, %v1145_v19 }
 0x11e   : > { %2125 = vmatprep.subr.msk.mxu1 %vm458_vm3, %v217_v18  ;;  %2061 = vmatmul.mubr.msk.f32.gmra.mrb[10].mxu0 %vm387_vm1, %v1145_v19 }
 0x11f   : > { %2063 = vmatprep.mubr.msk.f32.mxu0 %vm387_vm1, %v703_v20 }
 0x120   : > { %2103 = vmatmul.mubr.msk.f32.gmra.mrb[6].mxu1 %vm387_vm1, %v703_v20 }
 0x121   : > { %2105 = vmatprep.mubr.msk.f32.mxu1 %vm387_vm1, %v1147_v21 }
 0x122   : > { %2064 = vmatmul.mubr.msk.f32.gmra.mrb[12].mxu0 %vm387_vm1, %v1147_v21 }
 0x123   : > { %2066 = vmatprep.mubr.msk.f32.mxu0 %vm387_vm1, %v705_v22 }
 0x124   : > { %2106 = vmatmul.mubr.msk.f32.gmra.mrb[0].mxu1 %vm387_vm1, %v705_v22 }
 0x125   : > { %2108 = vmatprep.mubr.msk.f32.mxu1 %vm387_vm1, %v1149_v23 }
 0x126   : > { %2067 = vmatmul.mubr.msk.f32.gmra.mrb[14].mxu0 %vm387_vm1, %v1149_v23 }
 0x127   : > { %2071 = vmatprep.mubr.msk.f32.mxu0 %vm387_vm1, %v419_v9 }
 0x128   : > { %2109 = vmatmul.mubr.msk.f32.gmra.mrb[2].mxu1 %vm387_vm1, %v1150_v24 }
 0x129   : > { %2113 = vmatprep.mubr.msk.f32.mxu1 %vm387_vm1, %v420_v10 }
 0x12a   : > { %2072 = vmatmul.mubr.msk.f32.vlgmr.msra.gmra.mrb[8].mxu0 %vm387_vm1, %v420_v10 }
 0x12b   : > { %2074 = vmatprep.mubr.msk.f32.mxu0 %vm387_vm1, %v421_v12 }
 0x12c   : > { %2114 = vmatmul.mubr.msk.f32.vlgmr.msra.gmra.mrb[4].mxu1 %vm387_vm1, %v421_v12 }
 0x12d   : > { %2126 = vmatpush3.msk.msra.mxu1 %vm458_vm3, %v217_v18  ;;  %2116 = vmatprep.mubr.msk.f32.mxu1 %vm387_vm1, %v422_v13 }
 0x12e   : > { %2139 = vmatprep.subr.msk.mxu1 %vm458_vm3, %v218_v25  ;;  %2075 = vmatmul.mubr.msk.f32.gmra.mrb[10].mxu0 %vm387_vm1, %v422_v13 }
 0x130   : > { %2117 = vmatmul.mubr.msk.f32.gmra.mrb[6].mxu1 %vm387_vm1, %v2403_v1 }
 0x131   : > { %2119 = vmatprep.mubr.msk.f32.mxu1 %vm387_vm1, %v2411_v3 }
 0x134   : > { %2120 = vmatmul.mubr.msk.f32.gmra.mrb[0].mxu1 %vm387_vm1, %v2424_v7 }
 0x135   : > { %2122 = vmatprep.mubr.msk.f32.mxu1 %vm387_vm1, %v2431_v8 }
 0x138   : > { %2123 = vmatmul.mubr.msk.f32.gmra.mrb[2].mxu1 %vm387_vm1, %v1299_v26 }
 0x139   : > { %2127 = vmatprep.mubr.msk.f32.mxu1 %vm387_vm1, %v2385_v58 }
 0x13c   : > { %2128 = vmatmul.mubr.msk.f32.vlgmr.msra.gmra.mrb[4].mxu1 %vm387_vm1, %v2392_v62 }
 0x13d   : > { %2140 = vmatpush3.msk.msra.mxu1 %vm458_vm3, %v218_v25  ;;  %2130 = vmatprep.mubr.msk.f32.mxu1 %vm387_vm1, %v2397_v63 }
 0x140   : > { %2131 = vmatmul.mubr.msk.f32.gmra.mrb[6].mxu1 %vm387_vm1, %v2401_v0 }
 0x141   : > { %2133 = vmatprep.mubr.msk.f32.mxu1 %vm387_vm1, %v2409_v2 }
 0x144   : > { %2134 = vmatmul.mubr.msk.f32.gmra.mrb[0].mxu1 %vm387_vm1, %v2422_v6 }
 0x145   : > { %2136 = vmatprep.mubr.msk.f32.mxu1 %vm387_vm1, %v1002_v15 }
 0x148   : > { %2137 = vmatmul.mubr.msk.f32.gmra.mrb[2].mxu1 %vm387_vm1, %v1447_v27 }
 0x149   : > { %2141 = vmatprep.mubr.msk.f32.mxu1 %vm387_vm1, %v701_v17 }
 0x14c   : > { %2142 = vmatmul.mubr.msk.f32.vlgmr.msra.gmra.mrb[4].mxu1 %vm387_vm1, %v1145_v19 }
 0x14d   : > { %2144 = vmatprep.mubr.msk.f32.mxu1 %vm387_vm1, %v703_v20 }
 0x150   : > { %2145 = vmatmul.mubr.msk.f32.gmra.mrb[6].mxu1 %vm387_vm1, %v1147_v21 }
 0x151   : > { %2147 = vmatprep.mubr.msk.f32.mxu1 %vm387_vm1, %v705_v22 }
 0x154   : > { %2148 = vmatmul.mubr.msk.f32.gmra.mrb[0].mxu1 %vm387_vm1, %v1149_v23 }
 0x155   : > { %2150 = vmatprep.mubr.msk.f32.mxu1 %vm387_vm1, %v1150_v24 }
 0x158   : > { %2151 = vmatmul.mubr.msk.f32.gmra.mrb[2].mxu1 %vm387_vm1, %v1595_v28 }
 0x1f5   : > { %v2065_v29 = vpop.f32.mrb[12].mxu0 }
 0x1f6   : > { %v820_v30 = vpop.f32.mrb[13].mxu0 }
 0x1f9   : > { %v2068_v31 = vpop.f32.mrb[14].mxu0 }
 0x1fa   : > { %v830_v32 = vpop.f32.mrb[15].mxu0 }
 0x1fd   : > { %v2073_v33 = vpop.f32.mrb[8].mxu0 }
 0x1fe   : > { %v948_v34 = vpop.f32.mrb[9].mxu0 }
 0x201   : > { %v2076_v35 = vpop.f32.mrb[10].mxu0 }
 0x202   : > { %v958_v36 = vpop.f32.mrb[11].mxu0 }
 0x21f   : > { %v2143_v37 = vpop.f32.mrb[4].mxu1 }
 0x220   : > { %v2171_v38 = vadd.f32 %v2143_v37, %v2073_v33  ;;  %v1689_v39 = vpop.f32.mrb[5].mxu1 }
 0x221   : > { %v2172_v40 = vadd.f32 %v1689_v39, %v948_v34 }
 0x222   : > { %1738 = vst.msk [vmem:[%s199_s11 + $0x8] sm:$0xff] %vm1736_vm12, %v2171_v38 }
 0x223   : > { %1737 = vst.msk [vmem:[%s199_s11] sm:$0xff] %vm1736_vm12, %v2172_v40  ;;  %v2146_v41 = vpop.f32.mrb[6].mxu1 }
 0x224   : > { %v2173_v42 = vadd.f32 %v2146_v41, %v2076_v35  ;;  %v1699_v43 = vpop.f32.mrb[7].mxu1 }
 0x225   : > { %v2174_v44 = vadd.f32 %v1699_v43, %v958_v36 }
 0x226   : > { %1740 = vst.msk [vmem:[%s199_s11 + $0x18] sm:$0xff] %vm1736_vm12, %v2173_v42 }
 0x227   : > { %1739 = vst.msk [vmem:[%s199_s11 + $0x10] sm:$0xff] %vm1736_vm12, %v2174_v44  ;;  %v2149_v45 = vpop.f32.mrb[0].mxu1 }
 0x228   : > { %v2175_v46 = vadd.f32 %v2149_v45, %v2065_v29  ;;  %v1709_v47 = vpop.f32.mrb[1].mxu1 }
 0x229   : > { %v2176_v48 = vadd.f32 %v1709_v47, %v820_v30 }
 0x22a   : > { %1742 = vst.msk [vmem:[%s199_s11 + $0x28] sm:$0xff] %vm1736_vm12, %v2175_v46 }
 0x22b   : > { %1741 = vst.msk [vmem:[%s199_s11 + $0x20] sm:$0xff] %vm1736_vm12, %v2176_v48  ;;  %v2152_v49 = vpop.f32.mrb[2].mxu1 }
 0x22c   : > { %v2177_v50 = vadd.f32 %v2152_v49, %v2068_v31  ;;  %v1719_v51 = vpop.f32.mrb[3].mxu1 }
 0x22d   : > { %v2178_v52 = vadd.f32 %v1719_v51, %v830_v32 }
 0x22e   : > { %1744 = vst.msk [vmem:[%s199_s11 + $0x38] sm:$0xff] %vm1736_vm12, %v2177_v50 }
 0x22f   : > { %1743 = vst.msk [vmem:[%s199_s11 + $0x30] sm:$0xff] %vm1736_vm12, %v2178_v52 }
 0x230 PF: > { %s14_s15 = sadd.s32 1, %s2250_s15  }
 0x231   : > { %p11_p4 = scmp.ge.s32.totalorder %s14_s15, 4  }
 0x233   :  { %13 = sbr.rel (!%p11_p4) target bundleno = 1 (0x1), region = 68 }

</bundles_post_ra>
